<compile_context>
chip_gen: v6e
topology: v6e:2x2x1
jax: 0.10.0
libtpu: 0.0.40
codegen_flags: <defaults>
</compile_context>

<pallas_src>
import jax
import jax.numpy as jnp
from jax import lax
from jax.experimental import pallas as pl
from jax.experimental.pallas import tpu as pltpu

BN_EPS = 1e-5


def gate_dnn_kernel(x_ref, w_ref, gb_ref, o_ref):
    x = x_ref[...]          # (N, D) f32, VMEM
    w = w_ref[...]          # (1, D) lane-dense weight row (PyTorch Linear layout), VMEM

    # Linear with F=1: VPU elementwise multiply + XLU lane reduce. No MXU, no bias
    # (bias cancels under train-mode BatchNorm).
    s = jnp.sum(x * w, axis=-1, keepdims=True)          # (N, 1)

    # BatchNorm1d (training mode): biased batch statistics over the batch axis.
    mean = jnp.mean(s, axis=0, keepdims=True)            # (1, 1)
    centered = s - mean
    var = jnp.mean(centered * centered, axis=0, keepdims=True)
    y = centered * lax.rsqrt(var + BN_EPS)

    # Affine: gamma/beta read as SMEM scalars (F == 1).
    gamma = gb_ref[0]
    beta = gb_ref[1]
    y = y * gamma + beta

    # Sigmoid: exp on EUP; reciprocal routed through pl.reciprocal (EUP seed).
    o_ref[...] = pl.reciprocal(1.0 + jnp.exp(-y), approx=False)


def gate_dnn_forward(x, w_row, gamma_beta):
    """x: (N, D) f32, w_row: (1, D) f32 (PyTorch Linear weight layout, F=1),
    gamma_beta: (2,) f32 = [gamma, beta]."""
    n, _ = x.shape
    return pl.pallas_call(
        gate_dnn_kernel,
        out_shape=jax.ShapeDtypeStruct((n, 1), jnp.float32),
        in_specs=[
            pl.BlockSpec(memory_space=pltpu.MemorySpace.VMEM),   # x (whole array)
            pl.BlockSpec(memory_space=pltpu.MemorySpace.VMEM),   # weight row (1, D)
            pl.BlockSpec(memory_space=pltpu.MemorySpace.SMEM),   # [gamma, beta] scalars
        ],
        out_specs=pl.BlockSpec(memory_space=pltpu.MemorySpace.VMEM),
    )(x, w_row, gamma_beta)


def reference_forward(x, w_row, b, gamma, beta):
    """Faithful pure-JAX reference of the PyTorch module (train-mode BN, with bias)."""
    s = x @ w_row.T + b                                   # nn.Linear
    mean = jnp.mean(s, axis=0, keepdims=True)
    var = jnp.mean((s - mean) ** 2, axis=0, keepdims=True)
    y = (s - mean) / jnp.sqrt(var + BN_EPS)
    y = y * gamma + beta
    return jax.nn.sigmoid(y)


if __name__ == "__main__":
    # Small shapes consistent with the module: batch N, in_features D, out_features F=1.
    N, D, F = 8, 512, 1

    key = jax.random.PRNGKey(0)
    kx, kw, kb = jax.random.split(key, 3)

    x = jax.random.normal(kx, (N, D), dtype=jnp.float32)

    # nn.Linear-style uniform init with bound 1/sqrt(D); weight in PyTorch (F, D) layout.
    bound = 1.0 / jnp.sqrt(jnp.float32(D))
    w = jax.random.uniform(kw, (F, D), dtype=jnp.float32, minval=-bound, maxval=bound)
    b = jax.random.uniform(kb, (F,), dtype=jnp.float32, minval=-bound, maxval=bound)

    # BatchNorm1d default affine params.
    gamma = jnp.ones((F,), dtype=jnp.float32)
    beta = jnp.zeros((F,), dtype=jnp.float32)
    gamma_beta = jnp.concatenate([gamma, beta]).astype(jnp.float32)   # (2,)

    out = gate_dnn_forward(x, w, gamma_beta)
    out = jax.block_until_ready(out)

    ref = reference_forward(x, w, b, gamma, beta)
    assert out.shape == (N, F)
    # Bias is folded away inside the kernel (exact cancellation under train-mode BN up to
    # float rounding), and the sigmoid divide goes through pl.reciprocal -> tiny (<1e-6)
    # numerical differences vs the reference.
    assert jnp.allclose(out, ref, atol=1e-4, rtol=1e-4), "mismatch vs reference"

    print("KERNEL_OK")
</pallas_src>

<mosaic_0001>
module attributes {stable_mosaic.version = 11 : i64} {
  func.func @gate_dnn_kernel(%arg0: memref<8x512xf32, #tpu.memory_space<vmem>>, %arg1: memref<1x512xf32, #tpu.memory_space<vmem>>, %arg2: memref<2xf32, #tpu.memory_space<smem>>, %arg3: memref<8x1xf32, #tpu.memory_space<vmem>>) attributes {dimension_semantics = [], scalar_prefetch = 0 : i64, scratch_operands = 0 : i64, tpu.core_type = #tpu.core_type<tc>} {
    %c0 = arith.constant 0 : index
    %c0_0 = arith.constant 0 : index
    %0 = vector.load %arg0[%c0, %c0_0] : memref<8x512xf32, #tpu.memory_space<vmem>>, vector<8x512xf32>
    %c0_1 = arith.constant 0 : index
    %c0_2 = arith.constant 0 : index
    %1 = vector.load %arg1[%c0_1, %c0_2] : memref<1x512xf32, #tpu.memory_space<vmem>>, vector<1x512xf32>
    %2 = vector.broadcast %1 : vector<1x512xf32> to vector<8x512xf32>
    %3 = arith.mulf %0, %2 : vector<8x512xf32>
    %cst = arith.constant dense<0.000000e+00> : vector<8xf32>
    %4 = vector.multi_reduction <add>, %3, %cst [1] : vector<8x512xf32> to vector<8xf32>
    %5 = vector.shape_cast %4 : vector<8xf32> to vector<8x1xf32>
    %cst_3 = arith.constant dense<0.000000e+00> : vector<1xf32>
    %6 = vector.multi_reduction <add>, %5, %cst_3 [0] : vector<8x1xf32> to vector<1xf32>
    %7 = vector.shape_cast %6 : vector<1xf32> to vector<1x1xf32>
    %cst_4 = arith.constant 8.000000e+00 : f32
    %8 = vector.broadcast %cst_4 : f32 to vector<1x1xf32>
    %9 = arith.divf %7, %8 : vector<1x1xf32>
    %10 = vector.broadcast %9 : vector<1x1xf32> to vector<8x1xf32>
    %11 = arith.subf %5, %10 : vector<8x1xf32>
    %12 = arith.mulf %11, %11 : vector<8x1xf32>
    %cst_5 = arith.constant dense<0.000000e+00> : vector<1xf32>
    %13 = vector.multi_reduction <add>, %12, %cst_5 [0] : vector<8x1xf32> to vector<1xf32>
    %14 = vector.shape_cast %13 : vector<1xf32> to vector<1x1xf32>
    %cst_6 = arith.constant 8.000000e+00 : f32
    %15 = vector.broadcast %cst_6 : f32 to vector<1x1xf32>
    %16 = arith.divf %14, %15 : vector<1x1xf32>
    %cst_7 = arith.constant 9.99999974E-6 : f32
    %17 = vector.broadcast %cst_7 : f32 to vector<1x1xf32>
    %18 = arith.addf %16, %17 : vector<1x1xf32>
    %19 = math.rsqrt %18 : vector<1x1xf32>
    %20 = vector.broadcast %19 : vector<1x1xf32> to vector<8x1xf32>
    %21 = arith.mulf %11, %20 : vector<8x1xf32>
    %c0_8 = arith.constant 0 : index
    %22 = memref.load %arg2[%c0_8] : memref<2xf32, #tpu.memory_space<smem>>
    %c1 = arith.constant 1 : index
    %23 = memref.load %arg2[%c1] : memref<2xf32, #tpu.memory_space<smem>>
    %24 = vector.broadcast %22 : f32 to vector<8x1xf32>
    %25 = arith.mulf %21, %24 : vector<8x1xf32>
    %26 = vector.broadcast %23 : f32 to vector<8x1xf32>
    %27 = arith.addf %25, %26 : vector<8x1xf32>
    %cst_9 = arith.constant 0.000000e+00 : f32
    %28 = vector.broadcast %cst_9 : f32 to vector<8x1xf32>
    %29 = arith.subf %28, %27 : vector<8x1xf32>
    %30 = math.exp %29 : vector<8x1xf32>
    %cst_10 = arith.constant 1.000000e+00 : f32
    %31 = vector.broadcast %cst_10 : f32 to vector<8x1xf32>
    %32 = arith.addf %31, %30 : vector<8x1xf32>
    %33 = tpu.reciprocal %32 : vector<8x1xf32> -> vector<8x1xf32>
    %c0_11 = arith.constant 0 : index
    %c0_12 = arith.constant 0 : index
    %34 = vector.load %arg3[%c0_11, %c0_12] : memref<8x1xf32, #tpu.memory_space<vmem>>, vector<8x1xf32>
    tpu.vector_store %arg3[%c0_11, %c0_12], %33 {strides = array<i32>} : memref<8x1xf32, #tpu.memory_space<vmem>>, vector<8x1xf32>,
    return
  }
}

</mosaic_0001>

<bundles_post_ra>
// kernel: tpu_custom_call.1
= control target key start
LH: loop header
LB: loop body
LE: loop exit
PB: predicated region body
PF: predicated region fallthrough
CT: control target
= control target key end

     0   :  { %8 = vsyncpa [#allocation3], 0  ;;  %s229_s0 = inlined_call_operand.hbm [shape: f32[8,512], index: 0, kind: input, shape index: {}]   ;;  %s230_s1 = inlined_call_operand.hbm [shape: f32[1,512], index: 1, kind: input, shape index: {}]   ;;  %s231_s2 = inlined_call_operand.vmem [shape: f32[2], index: 2, kind: input, shape index: {}]   ;;  %s232_s3 = inlined_call_operand.vmem [shape: f32[8,1], index: 3, kind: output, shape index: {}]  }
   0x1   :  { %9 = vsyncpa [#allocation6], 0 }
   0x2   :  { %10 = vsyncpa [#allocation4], 0  ;;  %s194_s12 = smov [#allocation2]   ;;  %s195_s14 = smov [#allocation5]  }
   0x3   :  { %s17_s13 = sshll.u32 %s194_s12, 4  ;;  %s27_s15 = sshll.u32 %s195_s14, 4  ;;  %s18_s13 = int_to_ptr.vmem [resolvable:$true] %s17_s13  ;;  %s28_s15 = int_to_ptr.vmem [resolvable:$true] %s27_s15 }
   0x4   :  { %s144_s16 = scalar_lea.vmem %s18_s13, 512  ;;  %p149_p1 = scmp.lt.s32.totalorder %s18_s13, %s18_s13 }
   0x5   :  { %p145_p0 = scmp.ne.s32.totalorder %s18_s13, %s144_s16  ;;  %p150_p2 = scmp.lt.s32.totalorder %s144_s16, %s144_s16 }
   0x7   :  { %p151_p3 = por %p150_p2, %p149_p1 }
   0x9   :  { %p152_p4 = pnand %p151_p3, %p145_p0 }
   0xb   :  { %155 = shalt.err (!%p152_p4)
}
   0xc   :  { %20 = dma.hbm_to_vmem [thread:$0]  %s229_s0, 512, %s18_s13, [#allocation3]  }
   0xd   :  { %s164_s19 = scalar_lea.vmem %s28_s15, 64  ;;  %p169_p6 = scmp.lt.s32.totalorder %s28_s15, %s28_s15 }
   0xe   :  { %p165_p5 = scmp.ne.s32.totalorder %s28_s15, %s164_s19  ;;  %p170_p7 = scmp.lt.s32.totalorder %s164_s19, %s164_s19 }
  0x10   :  { %p171_p8 = por %p170_p7, %p169_p6 }
  0x12   :  { %p172_p9 = pnand %p171_p8, %p165_p5 }
  0x14   :  { %175 = shalt.err (!%p172_p9)
}
  0x15   :  { %30 = dma.hbm_to_vmem [thread:$0]  %s230_s1, 64, %s28_s15, [#allocation6]  }
  0x16   :  { %s37_s24 = sshll.u32 %s231_s2, 4  ;;  %s38_s24 = int_to_ptr.vmem [resolvable:$true] %s37_s24 }
  0x17   :  { %s176_s25 = scalar_lea.vmem %s38_s24, 16  ;;  %p181_p11 = scmp.lt.s32.totalorder %s38_s24, %s38_s24 }
  0x18   :  { %p177_p10 = scmp.ne.s32.totalorder %s38_s24, %s176_s25  ;;  %p182_p12 = scmp.lt.s32.totalorder %s176_s25, %s176_s25 }
  0x1a   :  { %p183_p13 = por %p182_p12, %p181_p11 }
  0x1c   :  { %p184_p0 = pnand %p183_p13, %p177_p10 }
  0x1e   :  { %187 = shalt.err (!%p184_p0)
}
  0x1f   :  { %s196_s0 = smov [#allocation7]  }
  0x20   :  { %40 = dma.vmem_to_smem %s38_s24, 16, %s196_s0, [#allocation4]  }
  0x21   :  { %188 = dma.done.wait [#allocation3], 512  }
  0x22   :  { %189 = vsyncadd [#allocation3], 4294966784 }
  0x23   :  { %190 = dma.done.wait [#allocation6], 64  }
  0x24   :  { %191 = vsyncadd [#allocation6], 4294967232 }
  0x25   :  { %192 = dma.done.wait [#allocation4], 16  }
  0x26   :  { %193 = vsyncadd [#allocation4], 4294967280 }
  0x27   :  { %50 = sfence }
  0x28   :  { %v57_v0 = vlaneseq  ;;  %v55_v2 = vld [vmem:[#allocation5] sm:$0xf]  ;;  %v52_v8 = vld [vmem:[#allocation2 + $0x8] sm:$0xff]  ;;  %v53_v9 = vld [vmem:[#allocation2 + $0x10] sm:$0xff]  ;;  %s106_s1 = sld [smem:[#allocation7]]  ;;  %vm117_vm0 = vcmask 7168  }
  0x29   :  { %v51_v7 = vld [vmem:[#allocation2] sm:$0xff]  ;;  %v54_v14 = vld [vmem:[#allocation2 + $0x18] sm:$0xff]  ;;  %s126_s2 = sld [smem:[#allocation7 + $0x1]] }
  0x2a   :  { %v58_v1 = vshrl.u32 %v57_v0, 7 }
  0x2c   :  { %v59_v3 = vsub.s32 0, %v58_v1  ;;  %v63_v4 = vsub.s32 1, %v58_v1  ;;  %v67_v5 = vsub.s32 2, %v58_v1  ;;  %v71_v6 = vsub.s32 3, %v58_v1 }
  0x2e   :  { %v60_v10 = vrot.slane %v55_v2, %v59_v3  ;;  %v64_v11 = vrot.slane %v55_v2, %v63_v4  ;;  %v68_v12 = vrot.slane %v55_v2, %v67_v5  ;;  %v72_v13 = vrot.slane %v55_v2, %v71_v6 }
  0x2f   :  { %v108_v41 = vstv %s106_s1  ;;  %v110_v43 = vstv %s126_s2 }
  0x30   :  { %v77_v15 = vmul.f32 %v60_v10, %v51_v7  ;;  %v78_v16 = vmul.f32 %v64_v11, %v52_v8  ;;  %v79_v17 = vmul.f32 %v68_v12, %v53_v9  ;;  %v80_v18 = vmul.f32 %v72_v13, %v54_v14 }
  0x32   :  { %v81_v19 = vadd.f32 %v78_v16, %v77_v15 }
  0x34   :  { %v82_v20 = vadd.f32 %v81_v19, %v79_v17 }
  0x36   :  { %v83_v21 = vadd.f32 %v82_v20, %v80_v18 }
  0x38   :  { %84 = vadd.xlane.f32.xlu0 %v83_v21 }
  0xc1   :  { %v85_v22 = vpop.xlane.xlu0 %84 }
  0xc2   :  { %v86_v23 = vrot.slane %v85_v22, 4 }
  0xc4   :  { %v87_v24 = vadd.f32 %v86_v23, %v85_v22 }
  0xc6   :  { %v88_v25 = vrot.slane %v87_v24, 2 }
  0xc8   :  { %v89_v26 = vadd.f32 %v88_v25, %v87_v24 }
  0xca   :  { %v90_v27 = vrot.slane %v89_v26, 1 }
  0xcc   :  { %v91_v28 = vadd.f32 %v90_v27, %v89_v26 }
  0xce   :  { %v93_v29 = vmul.f32 0.125, %v91_v28 }
  0xd0   :  { %v94_v30 = vsub.f32 %v85_v22, %v93_v29 }
  0xd2   :  { %v95_v31 = vmul.f32 %v94_v30, %v94_v30 }
  0xd4   :  { %v96_v32 = vrot.slane %v95_v31, 4 }
  0xd6   :  { %v97_v33 = vadd.f32 %v96_v32, %v95_v31 }
  0xd8   :  { %v98_v34 = vrot.slane %v97_v33, 2 }
  0xda   :  { %v99_v35 = vadd.f32 %v98_v34, %v97_v33 }
  0xdc   :  { %v100_v36 = vrot.slane %v99_v35, 1 }
  0xde   :  { %v101_v37 = vadd.f32 %v100_v36, %v99_v35 }
  0xe0   :  { %v102_v38 = vmul.f32 0.125, %v101_v37 }
  0xe2   :  { %v103_v39 = vadd.f32 1e-05, %v102_v38 }
  0xe4   :  { %130 = vrsqrt.f32 %v103_v39 }
  0xf1   :  { %v131_v40 = vpop.eup %130 }
  0xf2   :  { %v105_v42 = vmul.f32 %v131_v40, %v94_v30 }
  0xf4   :  { %v109_v44 = vmul.f32 %v108_v41, %v105_v42 }
  0xf6   :  { %v111_v45 = vadd.f32 %v110_v43, %v109_v44 }
  0xf8   :  { %v112_v46 = vsub.f32 0.0, %v111_v45 }
  0xfa   :  { %v113_v47 = vmul.f32 1.442695, %v112_v46 }
  0xfc   :  { %132 = vpow2.f32 %v113_v47 }
 0x109   :  { %v133_v48 = vpop.eup %132 }
 0x10a   :  { %v115_v49 = vadd.f32 1.0, %v133_v48 }
 0x10c   :  { %134 = vrcp.f32 %v115_v49 }
 0x119   :  { %v135_v50 = vpop.eup %134 }
 0x11a   :  { %118 = vst.msk [vmem:[%s232_s3] sm:$0xff] %vm117_vm0, %v135_v50 }
 0x11b   :  { %123 = vsyncpa [#allocation3], 1 }
 0x11c   :  { %124 = vsyncpa [#allocation6], 1 }
 0x11d   :  { %125 = vsyncpa [#allocation4], 1 }

</bundles_post_ra>
